<compile_context>
chip_gen: v6e
topology: v6e:2x2x1
jax: 0.10.0
libtpu: 0.0.40
codegen_flags: <defaults>
</compile_context>

<pallas_src>
import functools

import jax
import jax.numpy as jnp
from jax.experimental import pallas as pl
from jax.experimental.pallas import tpu as pltpu


def _focal_loss_kernel(gamma, num_classes, alpha_vals,
                       preds_ref, labels_ref, out_ref):
    """One tile: preds (C, T) with N on lanes, labels (1, T) int32, out (1, T)."""
    preds = preds_ref[...].astype(jnp.float32)          # (C, T)
    labels = labels_ref[...]                             # (1, T) int32

    # max over classes: C-1 VPU maximums on lane-dense rows (no XLU reduce)
    m = preds[0:1, :]
    for c in range(1, num_classes):
        m = jnp.maximum(m, preds[c:c + 1, :])

    # one pass over classes: softmax denominator + "gather" of the target
    # logit and its alpha via VPU selects (alpha baked in as constants)
    s = jnp.zeros_like(m)
    x_t = jnp.zeros_like(m)
    a_t = jnp.zeros_like(m)
    for c in range(num_classes):
        row = preds[c:c + 1, :]
        s = s + jnp.exp(row - m)
        sel = labels == c
        x_t = jnp.where(sel, row, x_t)
        a_t = jnp.where(sel, jnp.float32(alpha_vals[c]), a_t)

    logp_t = x_t - m - jnp.log(s)                        # log_softmax at target
    p_t = jnp.exp(logp_t)
    one_minus = jnp.maximum(1.0 - p_t, 0.0)              # guard tiny negatives

    # (1 - p_t)^gamma
    if float(gamma) == int(gamma) and gamma >= 0:
        focal = jnp.ones_like(one_minus)
        for _ in range(int(gamma)):
            focal = focal * one_minus                     # VPU multiplies only
    else:
        focal = jnp.exp(jnp.float32(gamma) *
                        jnp.log(jnp.maximum(one_minus, jnp.float32(1e-30))))

    out_ref[...] = (-a_t * focal * logp_t).astype(out_ref.dtype)


@functools.lru_cache(maxsize=None)
def _build_focal_loss_fn(gamma, alpha_vals):
    """Returns a jitted (preds, labels) -> (1, N) loss fn for this config."""
    num_classes = len(alpha_vals)

    @jax.jit
    def fn(preds, labels):
        C = preds.shape[-1]
        assert C == num_classes

        preds2d = preds.reshape(-1, C)                    # (N, C), caller dtype
        N = preds2d.shape[0]
        preds_cn = preds2d.T                              # (C, N): N on lanes
        labels_1n = labels.reshape(1, -1).astype(jnp.int32)   # (1, N)

        # Tile size: ~2 MiB of input+output per pipeline step (double-buffered
        # ~4 MiB) -> fits v5e's 16 MiB scoped VMEM, v7x's 32 MiB, amortizes the
        # per-step grid overhead against HBM bandwidth.
        bytes_per_col = (C + 2) * 4
        tile = max(512, min(128 * 1024, (2 * 1024 * 1024) // bytes_per_col))
        tile_n = max(128, (tile // 128) * 128)
        tile_n = min(tile_n, pl.cdiv(N, 128) * 128)

        n_pad = pl.cdiv(N, tile_n) * tile_n
        if n_pad != N:
            preds_cn = jnp.pad(preds_cn, ((0, 0), (0, n_pad - N)))
            labels_1n = jnp.pad(labels_1n, ((0, 0), (0, n_pad - N)))

        kernel = functools.partial(_focal_loss_kernel, gamma, C, alpha_vals)

        loss = pl.pallas_call(
            kernel,
            out_shape=jax.ShapeDtypeStruct((1, n_pad), jnp.float32),
            grid=(n_pad // tile_n,),
            in_specs=[
                pl.BlockSpec((C, tile_n), lambda i: (0, i)),
                pl.BlockSpec((1, tile_n), lambda i: (0, i)),
            ],
            out_specs=pl.BlockSpec((1, tile_n), lambda i: (0, i)),
            compiler_params=pltpu.CompilerParams(
                dimension_semantics=("parallel",)),
        )(preds_cn, labels_1n)

        # PyTorch returns alpha * loss.t()  -> shape (1, N)
        return loss[:, :N]

    return fn


class FocalLossPallas:
    def __init__(self, alpha=0.75, gamma=2, num_classes=2, size_average=True):
        self.size_average = size_average   # unused in forward (matches PyTorch)
        self.gamma = gamma
        self.num_classes = num_classes
        if isinstance(alpha, (list, tuple)):
            assert len(alpha) == num_classes
            vals = [float(a) for a in alpha]
        else:
            assert alpha < 1
            vals = [float(alpha)] + [1.0 - float(alpha)] * (num_classes - 1)
        self._alpha_vals = tuple(vals)                       # compile-time consts
        self.alpha = jnp.asarray(vals, dtype=jnp.float32)    # for reference use
        self._fn = _build_focal_loss_fn(self.gamma, self._alpha_vals)

    def __call__(self, preds, labels, weight=None):
        # weight is unused, exactly like the reference module's forward.
        return self._fn(preds, labels)


def _reference(preds, labels, alpha, gamma):
    C = preds.shape[-1]
    preds2d = preds.reshape(-1, C).astype(jnp.float32)
    logp = jax.nn.log_softmax(preds2d, axis=1)
    p = jnp.exp(logp)
    lab = labels.reshape(-1)
    p_t = jnp.take_along_axis(p, lab[:, None], axis=1)
    logp_t = jnp.take_along_axis(logp, lab[:, None], axis=1)
    a_t = alpha[lab]
    loss = -jnp.power(1.0 - p_t, gamma) * logp_t           # (N, 1)
    return a_t * loss.T                                     # (1, N)


if __name__ == "__main__":
    key = jax.random.PRNGKey(0)
    k1, k2 = jax.random.split(key)

    B, S, C = 2, 8, 2                                       # preds: (2, 8, 2)
    preds = jax.random.normal(k1, (B, S, C), dtype=jnp.float32)
    labels = jax.random.randint(k2, (B, S), 0, C, dtype=jnp.int32)
    weight = jnp.ones((B * S,), dtype=jnp.float32)          # unused by forward

    fl = FocalLossPallas(alpha=0.75, gamma=2, num_classes=C)
    out = fl(preds, labels, weight)
    out = jax.block_until_ready(out)

    ref = _reference(preds, labels, fl.alpha, fl.gamma)
    assert out.shape == (1, B * S), out.shape
    assert jnp.allclose(out, ref, atol=1e-5, rtol=1e-5), (out, ref)

    print("KERNEL_OK")
</pallas_src>

<mosaic_0001>
module attributes {stable_mosaic.version = 11 : i64} {
  func.func @_focal_loss_kernel(%arg0: i32, %arg1: memref<2x128xf32, #tpu.memory_space<vmem>>, %arg2: memref<1x128xi32, #tpu.memory_space<vmem>>, %arg3: memref<1x128xf32, #tpu.memory_space<vmem>>) attributes {dimension_semantics = [#tpu.dimension_semantics<parallel>], iteration_bounds = array<i64: 1>, scalar_prefetch = 0 : i64, scratch_operands = 0 : i64, tpu.core_type = #tpu.core_type<tc>, window_params = [{transform_indices = @transform_0, window_bounds = array<i64: 2, 128>}, {transform_indices = @transform_1, window_bounds = array<i64: 1, 128>}, {transform_indices = @transform_2, window_bounds = array<i64: 1, 128>}]} {
    %c0 = arith.constant 0 : index
    %c0_0 = arith.constant 0 : index
    %0 = vector.load %arg1[%c0, %c0_0] : memref<2x128xf32, #tpu.memory_space<vmem>>, vector<2x128xf32>
    %c0_1 = arith.constant 0 : index
    %c0_2 = arith.constant 0 : index
    %1 = vector.load %arg2[%c0_1, %c0_2] : memref<1x128xi32, #tpu.memory_space<vmem>>, vector<1x128xi32>
    %2 = vector.extract_strided_slice %0 {offsets = [0, 0], sizes = [1, 128], strides = [1, 1]} : vector<2x128xf32> to vector<1x128xf32>
    %3 = vector.extract_strided_slice %0 {offsets = [1, 0], sizes = [1, 128], strides = [1, 1]} : vector<2x128xf32> to vector<1x128xf32>
    %4 = arith.maximumf %2, %3 : vector<1x128xf32>
    %cst = arith.constant 0.000000e+00 : f32
    %5 = vector.broadcast %cst : f32 to vector<1x128xf32>
    %cst_3 = arith.constant 0.000000e+00 : f32
    %6 = vector.broadcast %cst_3 : f32 to vector<1x128xf32>
    %cst_4 = arith.constant 0.000000e+00 : f32
    %7 = vector.broadcast %cst_4 : f32 to vector<1x128xf32>
    %8 = vector.extract_strided_slice %0 {offsets = [0, 0], sizes = [1, 128], strides = [1, 1]} : vector<2x128xf32> to vector<1x128xf32>
    %9 = arith.subf %8, %4 : vector<1x128xf32>
    %10 = math.exp %9 : vector<1x128xf32>
    %11 = arith.addf %5, %10 : vector<1x128xf32>
    %c0_i32 = arith.constant 0 : i32
    %12 = vector.broadcast %c0_i32 : i32 to vector<1x128xi32>
    %13 = arith.cmpi eq, %1, %12 : vector<1x128xi32>
    %14 = arith.select %13, %8, %6 : vector<1x128xi1>, vector<1x128xf32>
    %cst_5 = arith.constant 7.500000e-01 : f32
    %15 = vector.broadcast %cst_5 : f32 to vector<1x128xf32>
    %16 = arith.select %13, %15, %7 : vector<1x128xi1>, vector<1x128xf32>
    %17 = vector.extract_strided_slice %0 {offsets = [1, 0], sizes = [1, 128], strides = [1, 1]} : vector<2x128xf32> to vector<1x128xf32>
    %18 = arith.subf %17, %4 : vector<1x128xf32>
    %19 = math.exp %18 : vector<1x128xf32>
    %20 = arith.addf %11, %19 : vector<1x128xf32>
    %c1_i32 = arith.constant 1 : i32
    %21 = vector.broadcast %c1_i32 : i32 to vector<1x128xi32>
    %22 = arith.cmpi eq, %1, %21 : vector<1x128xi32>
    %23 = arith.select %22, %17, %14 : vector<1x128xi1>, vector<1x128xf32>
    %cst_6 = arith.constant 2.500000e-01 : f32
    %24 = vector.broadcast %cst_6 : f32 to vector<1x128xf32>
    %25 = arith.select %22, %24, %16 : vector<1x128xi1>, vector<1x128xf32>
    %26 = arith.subf %23, %4 : vector<1x128xf32>
    %27 = math.log %20 : vector<1x128xf32>
    %28 = arith.subf %26, %27 : vector<1x128xf32>
    %29 = math.exp %28 : vector<1x128xf32>
    %cst_7 = arith.constant 1.000000e+00 : f32
    %30 = vector.broadcast %cst_7 : f32 to vector<1x128xf32>
    %31 = arith.subf %30, %29 : vector<1x128xf32>
    %cst_8 = arith.constant 0.000000e+00 : f32
    %32 = vector.broadcast %cst_8 : f32 to vector<1x128xf32>
    %33 = arith.maximumf %31, %32 : vector<1x128xf32>
    %cst_9 = arith.constant 1.000000e+00 : f32
    %34 = vector.broadcast %cst_9 : f32 to vector<1x128xf32>
    %35 = arith.mulf %34, %33 : vector<1x128xf32>
    %36 = arith.mulf %35, %33 : vector<1x128xf32>
    %cst_10 = arith.constant 0.000000e+00 : f32
    %37 = vector.broadcast %cst_10 : f32 to vector<1x128xf32>
    %38 = arith.subf %37, %25 : vector<1x128xf32>
    %39 = arith.mulf %38, %36 : vector<1x128xf32>
    %40 = arith.mulf %39, %28 : vector<1x128xf32>
    %c0_11 = arith.constant 0 : index
    %c0_12 = arith.constant 0 : index
    %41 = vector.load %arg3[%c0_11, %c0_12] : memref<1x128xf32, #tpu.memory_space<vmem>>, vector<1x128xf32>
    tpu.vector_store %arg3[%c0_11, %c0_12], %40 {strides = array<i32>} : memref<1x128xf32, #tpu.memory_space<vmem>>, vector<1x128xf32>,
    return
  }
  func.func @transform_0(%arg0: i32) -> (i32, i32) {
    %c0_i32 = arith.constant 0 : i32
    %c0_i32_0 = arith.constant 0 : i32
    return %c0_i32, %arg0 : i32, i32
  }
  func.func @transform_1(%arg0: i32) -> (i32, i32) {
    %c0_i32 = arith.constant 0 : i32
    %c0_i32_0 = arith.constant 0 : i32
    return %c0_i32, %arg0 : i32, i32
  }
  func.func @transform_2(%arg0: i32) -> (i32, i32) {
    %c0_i32 = arith.constant 0 : i32
    %c0_i32_0 = arith.constant 0 : i32
    return %c0_i32, %arg0 : i32, i32
  }
}

</mosaic_0001>

<bundles_post_ra>
// kernel: fn.1
= control target key start
LH: loop header
LB: loop body
LE: loop exit
PB: predicated region body
PF: predicated region fallthrough
CT: control target
= control target key end

     0   :  { %s141_s0 = inlined_call_operand.vmem [shape: f32[2,128], index: 0, kind: input, shape index: {}]   ;;  %s142_s1 = inlined_call_operand.vmem [shape: s32[1,128], index: 1, kind: input, shape index: {}]   ;;  %s143_s2 = inlined_call_operand.hbm [shape: f32[1,128], index: 2, kind: output, shape index: {}]  }
   0x1   :  { %v12_v0 = vld [vmem:[%s141_s0] sm:$0x3] }
   0x2   :  { %v15_v1 = vrot.slane %v12_v0, 1 }
   0x3   :  { %7 = vsyncpa [#allocation3], 0  ;;  %v114_v8 = vmov 1966171168   ;;  %v39_v10 = vlaneseq  ;;  %v13_v19 = vld [vmem:[%s142_s1] sm:$0x1] }
   0x4   :  { %v17_v2 = vmax.f32 %v12_v0, %v15_v1  ;;  %v37_v9 = vunpack.c.l.s4 %v114_v8  ;;  %vm22_vm0 = vcmp.eq.s32.totalorder %v13_v19, 0  ;;  %vm35_vm1 = vcmp.eq.s32.totalorder %v13_v19, 1  ;;  %s116_s1 = smov [#allocation2]  }
   0x5   :  { %v40_v12 = vshrl.u32 %v39_v10, 7  ;;  %v23_v22 = vsel %vm22_vm0, %v12_v0, 0.0  ;;  %v115_v29 = vmov 0.0   ;;  %s73_s12 = sshll.u32 %s116_s1, 4  ;;  %s74_s12 = int_to_ptr.vmem [resolvable:$true] %s73_s12 }
   0x6   :  { %v18_v3 = vsub.f32 %v12_v0, %v17_v2  ;;  %v26_v4 = vrot.slane %v17_v2, 7  ;;  %v38_v11 = vunpack.c.0.s8 %v37_v9  ;;  %v24_v30 = vsel %vm22_vm0, 0.75, %v115_v29  ;;  %s92_s13 = scalar_lea.vmem %s74_s12, 16  ;;  %s96_s14 = scalar_lea.vmem %s74_s12, 32 }
   0x7   :  { %v53_v32 = vsel %vm35_vm1, 0.25, %v24_v30  ;;  %p93_p0 = scmp.ne.s32.totalorder %s74_s12, %s92_s13  ;;  %p97_p1 = scmp.lt.s32.totalorder %s74_s12, %s74_s12 }
   0x8   :  { %v19_v5 = vmul.f32 1.442695, %v18_v3  ;;  %v28_v6 = vsub.f32 %v12_v0, %v26_v4  ;;  %v41_v13 = vsub.s32 %v38_v11, %v40_v12  ;;  %v63_v35 = vsub.f32 0.0, %v53_v32  ;;  %p98_p2 = scmp.lt.s32.totalorder %s96_s14, %s92_s13 }
   0xa   :  { %v29_v7 = vmul.f32 1.442695, %v28_v6  ;;  %84 = vpow2.f32 %v19_v5  ;;  %v42_v17 = vrot.slane %v12_v0, %v41_v13  ;;  %p99_p3 = por %p98_p2, %p97_p1 }
   0xc   :  { %86 = vpow2.f32 %v29_v7  ;;  %v43_v20 = vcombine.high %v42_v17, %v42_v17  ;;  %p100_p4 = pnand %p99_p3, %p93_p0 }
   0xe   :  { %v50_v21 = vrot.slane %v43_v20, %v41_v13 }
  0x10   :  { %v52_v23 = vsel %vm35_vm1, %v50_v21, %v23_v22 }
  0x11   :  { %v54_v24 = vsub.f32 %v52_v23, %v17_v2 }
  0x17   :  { %v85_v14 = vpop.eup %84 }
  0x19   :  { %v87_v15 = vpop.eup %86 }
  0x1a   :  { %v32_v16 = vrot.slane %v87_v15, 1 }
  0x1c   :  { %v34_v18 = vadd.f32 %v85_v14, %v32_v16 }
  0x1e   :  { %88 = vlog2.f32 %v34_v18 }
  0x2b   :  { %v89_v25 = vpop.eup %88 }
  0x2c   :  { %v56_v26 = vmul.f32 0.6931472, %v89_v25 }
  0x2e   :  { %v57_v27 = vsub.f32 %v54_v24, %v56_v26 }
  0x30   :  { %v58_v28 = vmul.f32 1.442695, %v57_v27 }
  0x32   :  { %90 = vpow2.f32 %v58_v28 }
  0x3f   :  { %v91_v31 = vpop.eup %90 }
  0x40   :  { %v60_v33 = vsub.f32 1.0, %v91_v31 }
  0x42   :  { %v61_v34 = vmax.f32 %v60_v33, 0.0 }
  0x44   :  { %v62_v36 = vmul.f32 %v61_v34, %v61_v34 }
  0x46   :  { %v64_v37 = vmul.f32 %v63_v35, %v62_v36 }
  0x48   :  { %v65_v38 = vmul.f32 %v64_v37, %v57_v27 }
  0x4a   :  { %66 = vst [vmem:[#allocation2] sm:$0x1] %v65_v38 }
  0x4b   :  { %103 = shalt.err (!%p100_p4)
}
  0x4c   :  { %76 = dma.vmem_to_hbm [thread:$0]  %s74_s12, 16, %s143_s2, [#allocation3]  }
  0x4d   :  { %112 = dma.done.wait [#allocation3], 16  }
  0x4e   :  { %113 = vsyncadd [#allocation3], 4294967280 }
  0x4f   :  { %80 = vsyncpa [#allocation3], 1 }

</bundles_post_ra>
